<compile_context>
chip_gen: v5e
topology: v5e:2x2
jax: 0.10.0
libtpu: 0.0.40
codegen_flags: <defaults>
</compile_context>

<pallas_src>
import functools
import math

import jax
import jax.numpy as jnp
from jax.experimental import pallas as pl
from jax.experimental.pallas import tpu as pltpu

_MiB = 1024 * 1024
_VMEM_BUDGET = 40 * _MiB   # working-set target (fits v7x's 64 MiB with headroom)


def _round_up(x: int, m: int) -> int:
    return (x + m - 1) // m * m


# ---------------------------------------------------------------------------
# Kernels
# ---------------------------------------------------------------------------
def _liresmlp_resident_kernel(x_ref, w_ref, b_ref, o_ref):
    """Resident-weights path.  One grid step == one row tile, all layers.

    x_ref: (TM, Fp) f32      input rows for this tile
    w_ref: (depth, Fp, Fp)   full weight stack (bf16/f32), laid out (in, out)
    b_ref: (depth, 1, Fp) f32
    o_ref: (TM, Fp) f32
    """
    depth = w_ref.shape[0]

    def body(d, act):
        # bf16 MXU contraction, f32 accumulation; activation carried in f32.
        y = jnp.dot(act.astype(w_ref.dtype), w_ref[d],
                    preferred_element_type=jnp.float32)
        return jnp.maximum(y + b_ref[d], 0.0)  # activation = ReLU

    o_ref[...] = jax.lax.fori_loop(0, depth, body, x_ref[...], unroll=True)


def _liresmlp_stream_kernel(x_ref, w_ref, b_ref, o_ref):
    """Streaming path.  One grid step == (row tile i, layer d).

    The output block index is constant over d, so o_ref stays VMEM-resident
    across layers and serves as the running activation (no scratch needed);
    it only writes back to HBM when the row tile changes.
    """
    @pl.when(pl.program_id(1) == 0)
    def _init():
        o_ref[...] = x_ref[...]

    y = jnp.dot(o_ref[...].astype(w_ref.dtype), w_ref[0],
                preferred_element_type=jnp.float32)
    o_ref[...] = jnp.maximum(y + b_ref[0], 0.0)


# ---------------------------------------------------------------------------
# Wrappers
# ---------------------------------------------------------------------------
def prepare_params(eval_weight, bias, weight_dtype=jnp.bfloat16):
    """One-time (hoisted) weight prep: transpose to (in, out), pad features to
    a multiple of 128 (lane-dense), cast to the MXU dtype."""
    depth, feat, _ = eval_weight.shape
    fp = _round_up(feat, 128)

    w_t = jnp.transpose(eval_weight, (0, 2, 1)).astype(jnp.float32)
    if fp != feat:
        w_t = jnp.zeros((depth, fp, fp), jnp.float32).at[:, :feat, :feat].set(w_t)
    w_p = w_t.astype(weight_dtype)

    b = bias.astype(jnp.float32)
    if fp != feat:
        b = jnp.zeros((depth, fp), jnp.float32).at[:, :feat].set(b)
    b_p = b.reshape(depth, 1, fp)
    return w_p, b_p


@functools.partial(jax.jit, static_argnames=("block_m", "force_streaming"))
def liresmlp_forward(x, w_p, b_p, *, block_m=512, force_streaming=False):
    """Eval-mode LiResMLP forward.

    x:   (..., F) float32
    w_p: (depth, Fp, Fp)  padded, (in, out)-layout weights from prepare_params
    b_p: (depth, 1, Fp)   padded bias
    returns (..., F) float32
    """
    *lead, feat = x.shape
    depth, fp, _ = w_p.shape
    m = math.prod(lead) if lead else 1
    w_itemsize = w_p.dtype.itemsize

    # --- residency decision + VMEM-budgeted row tile -----------------------
    w_total = depth * fp * fp * w_itemsize
    resident = (not force_streaming) and \
        (2 * w_total + 2 * depth * fp * 4) <= _VMEM_BUDGET // 2

    if resident:
        fixed = 2 * w_total + 2 * depth * fp * 4          # weight+bias buffers
    else:
        fixed = 2 * fp * fp * w_itemsize + 2 * fp * 4     # W_d / b_d double-buffers
    per_row = 5 * fp * 4        # x (x2 buffers) + out (x2) + live activation, f32
    avail = max(_VMEM_BUDGET - fixed, 8 * per_row)
    tm = min(block_m, max(8, (avail // per_row) // 8 * 8), _round_up(m, 8))
    # keep >= 2 row tiles when possible so both v7x TensorCores / megacore work
    if m > 8 and _round_up(m, tm) // tm < 2:
        tm = _round_up(max(8, tm // 2), 8)
    mp = _round_up(m, tm)

    vmem_need = fixed + per_row * tm
    vmem_limit = int(min(max(vmem_need + vmem_need // 2, 32 * _MiB), 64 * _MiB))

    # --- pad activations (skipped when already lane/tile aligned) ----------
    x2 = x.reshape(m, feat).astype(jnp.float32)
    if (mp, fp) != (m, feat):
        x_p = jnp.zeros((mp, fp), jnp.float32).at[:m, :feat].set(x2)
    else:
        x_p = x2

    if resident:
        out_p = pl.pallas_call(
            _liresmlp_resident_kernel,
            out_shape=jax.ShapeDtypeStruct((mp, fp), jnp.float32),
            grid_spec=pltpu.PrefetchScalarGridSpec(
                num_scalar_prefetch=0,
                grid=(mp // tm,),
                in_specs=[
                    pl.BlockSpec((tm, fp), lambda i: (i, 0)),            # x tile
                    pl.BlockSpec((depth, fp, fp), lambda i: (0, 0, 0)),  # all W
                    pl.BlockSpec((depth, 1, fp), lambda i: (0, 0, 0)),   # all b
                ],
                out_specs=pl.BlockSpec((tm, fp), lambda i: (i, 0)),
            ),
            compiler_params=pltpu.CompilerParams(
                dimension_semantics=("parallel",),
                vmem_limit_bytes=vmem_limit),
        )(x_p, w_p, b_p)
    else:
        out_p = pl.pallas_call(
            _liresmlp_stream_kernel,
            out_shape=jax.ShapeDtypeStruct((mp, fp), jnp.float32),
            grid_spec=pltpu.PrefetchScalarGridSpec(
                num_scalar_prefetch=0,
                grid=(mp // tm, depth),
                in_specs=[
                    pl.BlockSpec((tm, fp), lambda i, d: (i, 0)),         # x tile
                    pl.BlockSpec((1, fp, fp), lambda i, d: (d, 0, 0)),   # W_d
                    pl.BlockSpec((1, 1, fp), lambda i, d: (d, 0, 0)),    # b_d
                ],
                out_specs=pl.BlockSpec((tm, fp), lambda i, d: (i, 0)),
            ),
            compiler_params=pltpu.CompilerParams(
                dimension_semantics=("parallel", "arbitrary"),
                vmem_limit_bytes=vmem_limit),
        )(x_p, w_p, b_p)

    return out_p[:m, :feat].reshape(*lead, feat)


# ---------------------------------------------------------------------------
# Host-side parameter construction + references
# ---------------------------------------------------------------------------
def _cholesky_orth(w):
    """Row-orthonormalize each (F, F) matrix via Cholesky (host-side JAX).

    Stand-in for the external CholeskyOrth used by LiResMLP.get_weight();
    the kernel itself just consumes whatever eval_weight it is given.
    """
    feat = w.shape[-1]
    gram = jnp.einsum("dij,dkj->dik", w, w,
                      precision=jax.lax.Precision.HIGHEST)
    gram = gram + 1e-6 * jnp.eye(feat, dtype=w.dtype)
    chol = jnp.linalg.cholesky(gram)
    return jax.scipy.linalg.solve_triangular(chol, w, lower=True)


def make_params(depth, width, key):
    """Parameter construction matching LiResMLP.__init__ + train(False)."""
    weights = jax.random.normal(key, (depth, width, width), jnp.float32)
    weights = weights / width
    gamma = jnp.ones((depth, width, 1), jnp.float32)
    bias = jnp.zeros((depth, width), jnp.float32)
    scale = depth ** (-0.5)

    identity = jnp.eye(width, dtype=jnp.float32)
    w_eff = identity[None] + weights * gamma * scale      # get_weight()
    eval_weight = _cholesky_orth(w_eff)                   # CholeskyOrth(W)
    return eval_weight, bias


def reference_forward(x, eval_weight, bias):
    """Pure-JAX f32 reference of the eval forward path."""
    y = x.astype(jnp.float32)
    for d in range(eval_weight.shape[0]):
        y = jnp.einsum("...i,oi->...o", y, eval_weight[d],
                       precision=jax.lax.Precision.HIGHEST)
        y = jnp.maximum(y + bias[d], 0.0)
    return y


def reference_forward_padded(x, w_p, b_p):
    """Pure-JAX reference using the same padded / MXU-dtype weights the kernel
    consumes (isolates kernel correctness from bf16 quantization drift)."""
    *lead, feat = x.shape
    depth, fp, _ = w_p.shape
    y = x.reshape(-1, feat).astype(jnp.float32)
    if fp != feat:
        y = jnp.pad(y, ((0, 0), (0, fp - feat)))
    for d in range(depth):
        y = jnp.dot(y.astype(w_p.dtype), w_p[d],
                    preferred_element_type=jnp.float32)
        y = jnp.maximum(y + b_p[d], 0.0)
    return y[:, :feat].reshape(*lead, feat)


if __name__ == "__main__":
    depth, width = 4, 32
    batch, seq = 2, 8

    key = jax.random.PRNGKey(0)
    k_x, k_p = jax.random.split(key)

    x = jax.random.normal(k_x, (batch, seq, width), jnp.float32)
    eval_weight, bias = make_params(depth, width, k_p)

    # Hoisted one-time weight prep (bf16 MXU path + an f32 variant for checks).
    w_bf16, b_p = prepare_params(eval_weight, bias, weight_dtype=jnp.bfloat16)
    w_f32, _ = prepare_params(eval_weight, bias, weight_dtype=jnp.float32)

    out = jax.block_until_ready(liresmlp_forward(x, w_bf16, b_p))
    out_stream = jax.block_until_ready(
        liresmlp_forward(x, w_bf16, b_p, force_streaming=True))
    out_f32 = jax.block_until_ready(liresmlp_forward(x, w_f32, b_p))

    ref_f32 = reference_forward(x, eval_weight, bias)
    ref_bf16 = reference_forward_padded(x, w_bf16, b_p)

    assert out.shape == (batch, seq, width)
    # Kernel math matches a same-precision reference (resident + streaming).
    assert jnp.allclose(out, ref_bf16, atol=1e-3, rtol=1e-3), \
        "resident kernel vs bf16 reference mismatch"
    assert jnp.allclose(out_stream, ref_bf16, atol=1e-3, rtol=1e-3), \
        "streaming kernel vs bf16 reference mismatch"
    # f32-weight kernel matches the high-precision reference tightly.
    assert jnp.allclose(out_f32, ref_f32, atol=1e-4, rtol=1e-4), \
        "f32 kernel vs f32 reference mismatch"
    # bf16 path drift vs f32 reference stays bounded across the full depth.
    assert jnp.allclose(out, ref_f32, atol=1e-1, rtol=1e-1), \
        "bf16 drift vs f32 reference too large"

    print("KERNEL_OK")
</pallas_src>

<mosaic_0001>
module attributes {stable_mosaic.version = 11 : i64} {
  func.func @_liresmlp_resident_kernel(%arg0: i32, %arg1: memref<8x128xf32, #tpu.memory_space<vmem>>, %arg2: memref<4x128x128xbf16, #tpu.memory_space<vmem>>, %arg3: memref<4x1x128xf32, #tpu.memory_space<vmem>>, %arg4: memref<8x128xf32, #tpu.memory_space<vmem>>) attributes {dimension_semantics = [#tpu.dimension_semantics<parallel>], iteration_bounds = array<i64: 2>, scalar_prefetch = 0 : i64, scratch_operands = 0 : i64, tpu.core_type = #tpu.core_type<tc>, window_params = [{transform_indices = @transform_0, window_bounds = array<i64: 8, 128>}, {pipeline_mode = #tpu.pipeline_mode<synchronous>, transform_indices = @transform_1, window_bounds = array<i64: 4, 128, 128>}, {pipeline_mode = #tpu.pipeline_mode<synchronous>, transform_indices = @transform_2, window_bounds = array<i64: 4, 1, 128>}, {transform_indices = @transform_3, window_bounds = array<i64: 8, 128>}]} {
    %c0 = arith.constant 0 : index
    %c0_0 = arith.constant 0 : index
    %0 = vector.load %arg1[%c0, %c0_0] : memref<8x128xf32, #tpu.memory_space<vmem>>, vector<8x128xf32>
    %c0_i32 = arith.constant 0 : i32
    %1 = arith.truncf %0 : vector<8x128xf32> to vector<8x128xbf16>
    %2 = arith.index_cast %c0_i32 : i32 to index
    %c0_1 = arith.constant 0 : index
    %c0_2 = arith.constant 0 : index
    %3 = vector.load %arg2[%2, %c0_1, %c0_2] : memref<4x128x128xbf16, #tpu.memory_space<vmem>>, vector<1x128x128xbf16>
    %4 = vector.shape_cast %3 : vector<1x128x128xbf16> to vector<128x128xbf16>
    %cst = arith.constant dense<0.000000e+00> : vector<8x128xf32>
    %5 = tpu.matmul %1, %4, %cst {dimension_numbers = #tpu.dot_dimension_numbers<[1], [0], [0], [1], [0, 0, 1, 1], [], []>} : vector<8x128xbf16>, vector<128x128xbf16>, vector<8x128xf32> -> vector<8x128xf32>
    %6 = arith.index_cast %c0_i32 : i32 to index
    %c0_3 = arith.constant 0 : index
    %c0_4 = arith.constant 0 : index
    %7 = vector.load %arg3[%6, %c0_3, %c0_4] : memref<4x1x128xf32, #tpu.memory_space<vmem>>, vector<1x1x128xf32>
    %8 = vector.shape_cast %7 : vector<1x1x128xf32> to vector<1x128xf32>
    %9 = vector.broadcast %8 : vector<1x128xf32> to vector<8x128xf32>
    %10 = arith.addf %5, %9 : vector<8x128xf32>
    %cst_5 = arith.constant 0.000000e+00 : f32
    %11 = vector.broadcast %cst_5 : f32 to vector<8x128xf32>
    %12 = arith.maximumf %10, %11 : vector<8x128xf32>
    %c1_i32 = arith.constant 1 : i32
    %13 = arith.truncf %12 : vector<8x128xf32> to vector<8x128xbf16>
    %14 = arith.index_cast %c1_i32 : i32 to index
    %c0_6 = arith.constant 0 : index
    %c0_7 = arith.constant 0 : index
    %15 = vector.load %arg2[%14, %c0_6, %c0_7] : memref<4x128x128xbf16, #tpu.memory_space<vmem>>, vector<1x128x128xbf16>
    %16 = vector.shape_cast %15 : vector<1x128x128xbf16> to vector<128x128xbf16>
    %cst_8 = arith.constant dense<0.000000e+00> : vector<8x128xf32>
    %17 = tpu.matmul %13, %16, %cst_8 {dimension_numbers = #tpu.dot_dimension_numbers<[1], [0], [0], [1], [0, 0, 1, 1], [], []>} : vector<8x128xbf16>, vector<128x128xbf16>, vector<8x128xf32> -> vector<8x128xf32>
    %18 = arith.index_cast %c1_i32 : i32 to index
    %c0_9 = arith.constant 0 : index
    %c0_10 = arith.constant 0 : index
    %19 = vector.load %arg3[%18, %c0_9, %c0_10] : memref<4x1x128xf32, #tpu.memory_space<vmem>>, vector<1x1x128xf32>
    %20 = vector.shape_cast %19 : vector<1x1x128xf32> to vector<1x128xf32>
    %21 = vector.broadcast %20 : vector<1x128xf32> to vector<8x128xf32>
    %22 = arith.addf %17, %21 : vector<8x128xf32>
    %cst_11 = arith.constant 0.000000e+00 : f32
    %23 = vector.broadcast %cst_11 : f32 to vector<8x128xf32>
    %24 = arith.maximumf %22, %23 : vector<8x128xf32>
    %c2_i32 = arith.constant 2 : i32
    %25 = arith.truncf %24 : vector<8x128xf32> to vector<8x128xbf16>
    %26 = arith.index_cast %c2_i32 : i32 to index
    %c0_12 = arith.constant 0 : index
    %c0_13 = arith.constant 0 : index
    %27 = vector.load %arg2[%26, %c0_12, %c0_13] : memref<4x128x128xbf16, #tpu.memory_space<vmem>>, vector<1x128x128xbf16>
    %28 = vector.shape_cast %27 : vector<1x128x128xbf16> to vector<128x128xbf16>
    %cst_14 = arith.constant dense<0.000000e+00> : vector<8x128xf32>
    %29 = tpu.matmul %25, %28, %cst_14 {dimension_numbers = #tpu.dot_dimension_numbers<[1], [0], [0], [1], [0, 0, 1, 1], [], []>} : vector<8x128xbf16>, vector<128x128xbf16>, vector<8x128xf32> -> vector<8x128xf32>
    %30 = arith.index_cast %c2_i32 : i32 to index
    %c0_15 = arith.constant 0 : index
    %c0_16 = arith.constant 0 : index
    %31 = vector.load %arg3[%30, %c0_15, %c0_16] : memref<4x1x128xf32, #tpu.memory_space<vmem>>, vector<1x1x128xf32>
    %32 = vector.shape_cast %31 : vector<1x1x128xf32> to vector<1x128xf32>
    %33 = vector.broadcast %32 : vector<1x128xf32> to vector<8x128xf32>
    %34 = arith.addf %29, %33 : vector<8x128xf32>
    %cst_17 = arith.constant 0.000000e+00 : f32
    %35 = vector.broadcast %cst_17 : f32 to vector<8x128xf32>
    %36 = arith.maximumf %34, %35 : vector<8x128xf32>
    %c3_i32 = arith.constant 3 : i32
    %37 = arith.truncf %36 : vector<8x128xf32> to vector<8x128xbf16>
    %38 = arith.index_cast %c3_i32 : i32 to index
    %c0_18 = arith.constant 0 : index
    %c0_19 = arith.constant 0 : index
    %39 = vector.load %arg2[%38, %c0_18, %c0_19] : memref<4x128x128xbf16, #tpu.memory_space<vmem>>, vector<1x128x128xbf16>
    %40 = vector.shape_cast %39 : vector<1x128x128xbf16> to vector<128x128xbf16>
    %cst_20 = arith.constant dense<0.000000e+00> : vector<8x128xf32>
    %41 = tpu.matmul %37, %40, %cst_20 {dimension_numbers = #tpu.dot_dimension_numbers<[1], [0], [0], [1], [0, 0, 1, 1], [], []>} : vector<8x128xbf16>, vector<128x128xbf16>, vector<8x128xf32> -> vector<8x128xf32>
    %42 = arith.index_cast %c3_i32 : i32 to index
    %c0_21 = arith.constant 0 : index
    %c0_22 = arith.constant 0 : index
    %43 = vector.load %arg3[%42, %c0_21, %c0_22] : memref<4x1x128xf32, #tpu.memory_space<vmem>>, vector<1x1x128xf32>
    %44 = vector.shape_cast %43 : vector<1x1x128xf32> to vector<1x128xf32>
    %45 = vector.broadcast %44 : vector<1x128xf32> to vector<8x128xf32>
    %46 = arith.addf %41, %45 : vector<8x128xf32>
    %cst_23 = arith.constant 0.000000e+00 : f32
    %47 = vector.broadcast %cst_23 : f32 to vector<8x128xf32>
    %48 = arith.maximumf %46, %47 : vector<8x128xf32>
    %c4_i32 = arith.constant 4 : i32
    %c0_24 = arith.constant 0 : index
    %c0_25 = arith.constant 0 : index
    %49 = vector.load %arg4[%c0_24, %c0_25] : memref<8x128xf32, #tpu.memory_space<vmem>>, vector<8x128xf32>
    tpu.vector_store %arg4[%c0_24, %c0_25], %48 {strides = array<i32>} : memref<8x128xf32, #tpu.memory_space<vmem>>, vector<8x128xf32>,
    return
  }
  func.func @transform_0(%arg0: i32) -> (i32, i32) {
    %c0_i32 = arith.constant 0 : i32
    %c0_i32_0 = arith.constant 0 : i32
    return %arg0, %c0_i32 : i32, i32
  }
  func.func @transform_1(%arg0: i32) -> (i32, i32, i32) {
    %c0_i32 = arith.constant 0 : i32
    %c0_i32_0 = arith.constant 0 : i32
    %c0_i32_1 = arith.constant 0 : i32
    %c0_i32_2 = arith.constant 0 : i32
    return %c0_i32, %c0_i32_0, %c0_i32_1 : i32, i32, i32
  }
  func.func @transform_2(%arg0: i32) -> (i32, i32, i32) {
    %c0_i32 = arith.constant 0 : i32
    %c0_i32_0 = arith.constant 0 : i32
    %c0_i32_1 = arith.constant 0 : i32
    %c0_i32_2 = arith.constant 0 : i32
    return %c0_i32, %c0_i32_0, %c0_i32_1 : i32, i32, i32
  }
  func.func @transform_3(%arg0: i32) -> (i32, i32) {
    %c0_i32 = arith.constant 0 : i32
    %c0_i32_0 = arith.constant 0 : i32
    return %arg0, %c0_i32 : i32, i32
  }
}

</mosaic_0001>

<bundles_post_ra>
// kernel: liresmlp_forward.1
= control target key start
LH: loop header
LB: loop body
LE: loop exit
PB: predicated region body
PF: predicated region fallthrough
CT: control target
= control target key end

     0   :  { %8 = vsyncpa [#allocation3], 0  ;;  %s852_s12 = smov 0   ;;  %s896_s0 = inlined_call_operand.vmem [shape: f32[16,128], index: 0, kind: input, shape index: {}]   ;;  %s897_s1 = inlined_call_operand.hbm [shape: bf16[4,128,128], index: 1, kind: input, shape index: {}]   ;;  %s898_s2 = inlined_call_operand.vmem [shape: f32[4,1,128], index: 2, kind: input, shape index: {}]   ;;  %s899_s3 = inlined_call_operand.vmem [shape: f32[16,128], index: 3, kind: output, shape index: {}]  }
   0x1 LB: > { %s124_s15 = sshll.u32 %s897_s1, 4  ;;  %s861_s16 = sadd.s32 4294967295, %s827_s12   ;;  %s827_s12 = sphi %s852_s12, %s14_s12   ;;  %s125_s15 = int_to_ptr.hbm [resolvable:$true] %s124_s15 }
   0x2   : > { %p590_p0 = scmp.ge.s32.totalorder %s827_s12, 1  ;;  %p113_p1 = scmp.lt.s32.totalorder %s827_s12, 3 }
   0x3   : > { %p770_p2 = scmp.eq.s32.totalorder %s861_s16, 0  ;;  %s829_s17 = smov [#allocation2]  }
   0x4   : > { %p114_p3 = pnand %p590_p0, %p113_p1  ;;  %s126_s18 = sshll.u32 %s829_s17, 4  ;;  %s127_s18 = int_to_ptr.vmem [resolvable:$true] %s126_s18 }
   0x5   : > { %s830_s19 = smov 64   ;;  %s831_s20 = smov 4  }
   0x6   : > { %p766_p4 = pneg %p114_p3  ;;  %152 = sbr.rel (%p114_p3) target bundleno = 586 (0x24a), region = 32 }
   0x8   : > { %p767_p5 = pnand %p770_p2, %p766_p4 }
   0xa   : > { %769 = dma.hbm_to_vmem [thread:$0]  (!%p767_p5), %s125_s15, 4096, %s127_s18, [#allocation3], %s830_s19, %s830_s19, %s831_s20  }
   0xb   : > { %822 = dma.done.wait (%p770_p2), [#allocation3], 4096  }
   0xc   : > { %824 = vsyncadd (%p770_p2), [#allocation3], 4294963200  ;;  %v737_v0 = vld [vmem:[#allocation2 + $0x38] sm:$0xff]  ;;  %v736_v1 = vld [vmem:[#allocation2 + $0x30] sm:$0xff]  ;;  %p175_p6 = scmp.lt.s32.totalorder %s861_s16, 1 }
   0xd   : > { %253 = vmatpush.bf16.msra.mxu0 %v737_v0  ;;  %v745_v2 = vld [vmem:[#allocation2 + $0x78] sm:$0xff]  ;;  %v744_v3 = vld [vmem:[#allocation2 + $0x70] sm:$0xff]  ;;  %v735_v4 = vld [vmem:[#allocation2 + $0x28] sm:$0xff] }
   0xe   : > { %338 = vmatpush.bf16.msra.mxu1 %v745_v2  ;;  %v743_v5 = vld [vmem:[#allocation2 + $0x68] sm:$0xff]  ;;  %v734_v6 = vld [vmem:[#allocation2 + $0x20] sm:$0xff]  ;;  %v733_v8 = vld [vmem:[#allocation2 + $0x18] sm:$0xff]  ;;  %s901_s16 = smov (!%p175_p6, %s861_s16), 1 }
   0xf   : > { %v742_v7 = vld [vmem:[#allocation2 + $0x60] sm:$0xff]  ;;  %v741_v9 = vld [vmem:[#allocation2 + $0x58] sm:$0xff]  ;;  %v732_v10 = vld [vmem:[#allocation2 + $0x10] sm:$0xff]  ;;  %s595_s21 = sshll.u32 %s901_s16, 3 }
  0x10   : > { %v740_v11 = vld [vmem:[#allocation2 + $0x50] sm:$0xff]  ;;  %v731_v12 = vld [vmem:[#allocation2 + $0x8] sm:$0xff]  ;;  %s178_s24 = scalar_lea.vmem %s896_s0, %s595_s21  ;;  %v730_v13 = vld [vmem:[#allocation2] sm:$0xff]  ;;  %s182_s8 = scalar_lea.vmem %s899_s3, %s595_s21 }
  0x11   : > { %254 = vmatpush.bf16.msra.mxu0 %v736_v1  ;;  %v183_v14 = vld [vmem:[%s178_s24] sm:$0xff]  ;;  %v739_v16 = vld [vmem:[#allocation2 + $0x48] sm:$0xff]  ;;  %v753_v18 = vld [vmem:[#allocation2 + $0xb8] sm:$0xff] }
  0x12   : > { %339 = vmatpush.bf16.msra.mxu1 %v744_v3  ;;  %v184_v15 = vpack.c.bf16 %v183_v14, %v183_v14  ;;  %v738_v17 = vld [vmem:[#allocation2 + $0x40] sm:$0xff]  ;;  %423 = vmatpush.bf16.msra.mxu2 %v753_v18  ;;  %v752_v19 = vld [vmem:[#allocation2 + $0xb0] sm:$0xff]  ;;  %v751_v20 = vld [vmem:[#allocation2 + $0xa8] sm:$0xff] }
  0x13   : > { %v750_v21 = vld [vmem:[#allocation2 + $0xa0] sm:$0xff]  ;;  %v749_v22 = vld [vmem:[#allocation2 + $0x98] sm:$0xff]  ;;  %v748_v23 = vld [vmem:[#allocation2 + $0x90] sm:$0xff] }
  0x14   : > { %v783_v24 = vld [vmem:[%s898_s2] ss:$0 sm:$0xff]  ;;  %v747_v30 = vld [vmem:[#allocation2 + $0x88] sm:$0xff]  ;;  %v761_v32 = vld [vmem:[#allocation2 + $0xf8] sm:$0xff] }
  0x15   : > { %255 = vmatpush.bf16.msra.mxu0 %v735_v4  ;;  %v746_v31 = vld [vmem:[#allocation2 + $0x80] sm:$0xff]  ;;  %508 = vmatpush.bf16.msra.mxu3 %v761_v32  ;;  %v760_v33 = vld [vmem:[#allocation2 + $0xf0] sm:$0xff]  ;;  %v759_v34 = vld [vmem:[#allocation2 + $0xe8] sm:$0xff] }
  0x16   : > { %340 = vmatpush.bf16.msra.mxu1 %v743_v5  ;;  %424 = vmatpush.bf16.msra.mxu2 %v752_v19  ;;  %v758_v35 = vld [vmem:[#allocation2 + $0xe0] sm:$0xff]  ;;  %v757_v36 = vld [vmem:[#allocation2 + $0xd8] sm:$0xff]  ;;  %v756_v37 = vld [vmem:[#allocation2 + $0xd0] sm:$0xff] }
  0x17   : > { %v784_v38 = vld [vmem:[%s898_s2 + $0x1] ss:$0 sm:$0xff]  ;;  %v755_v44 = vld [vmem:[#allocation2 + $0xc8] sm:$0xff]  ;;  %v785_v46 = vld [vmem:[%s898_s2 + $0x2] ss:$0 sm:$0xff] }
  0x18   : > { %v754_v45 = vld [vmem:[#allocation2 + $0xc0] sm:$0xff] }
  0x19   : > { %256 = vmatpush.bf16.msra.mxu0 %v734_v6  ;;  %509 = vmatpush.bf16.msra.mxu3 %v760_v33  ;;  %v786_v52 = vld [vmem:[%s898_s2 + $0x3] ss:$0 sm:$0xff] }
  0x1a   : > { %341 = vmatpush.bf16.msra.mxu1 %v742_v7  ;;  %425 = vmatpush.bf16.msra.mxu2 %v751_v20 }
  0x1d   : > { %257 = vmatpush.bf16.msra.mxu0 %v733_v8  ;;  %510 = vmatpush.bf16.msra.mxu3 %v759_v34 }
  0x1e   : > { %342 = vmatpush.bf16.msra.mxu1 %v741_v9  ;;  %426 = vmatpush.bf16.msra.mxu2 %v750_v21 }
  0x21   : > { %258 = vmatpush.bf16.msra.mxu0 %v732_v10  ;;  %511 = vmatpush.bf16.msra.mxu3 %v758_v35 }
  0x22   : > { %343 = vmatpush.bf16.msra.mxu1 %v740_v11  ;;  %427 = vmatpush.bf16.msra.mxu2 %v749_v22 }
  0x25   : > { %259 = vmatpush.bf16.msra.mxu0 %v731_v12  ;;  %512 = vmatpush.bf16.msra.mxu3 %v757_v36 }
  0x26   : > { %344 = vmatpush.bf16.msra.mxu1 %v739_v16  ;;  %428 = vmatpush.bf16.msra.mxu2 %v748_v23 }
  0x29   : > { %260 = vmatpush.bf16.msra.mxu0 %v730_v13  ;;  %513 = vmatpush.bf16.msra.mxu3 %v756_v37 }
  0x2a   : > { %345 = vmatpush.bf16.msra.mxu1 %v738_v17  ;;  %429 = vmatpush.bf16.msra.mxu2 %v747_v30 }
  0x2c   : > { %261 = vmatmul.bf16.vlgmr.msra.gmra.mxu0 %v184_v15 }
  0x2d   : > { %514 = vmatpush.bf16.msra.mxu3 %v755_v44 }
  0x2e   : > { %430 = vmatpush.bf16.msra.mxu2 %v746_v31 }
  0x31   : > { %515 = vmatpush.bf16.msra.mxu3 %v754_v45 }
  0xa9   : > { %v262_v25 = vpop.f32.mrf.mxu0 }
  0xaa   : > { %v263_v26 = vadd.f32 %v783_v24, %v262_v25 }
  0xac   : > { %v266_v27 = vmax.f32 %v263_v26, 0.0 }
  0xae   : > { %v267_v28 = vpack.c.bf16 %v266_v27, %v266_v27 }
  0xb0   : > { %346 = vmatmul.bf16.vlgmr.msra.gmra.mxu1 %v267_v28 }
  0xb1   : > { %v264_v29 = vpop.f32.mrf.mxu0 }
 0x12d   : > { %v347_v39 = vpop.f32.mrf.mxu1 }
 0x12e   : > { %v348_v40 = vadd.f32 %v784_v38, %v347_v39 }
 0x130   : > { %v351_v41 = vmax.f32 %v348_v40, 0.0 }
 0x132   : > { %v352_v42 = vpack.c.bf16 %v351_v41, %v351_v41 }
 0x134   : > { %431 = vmatmul.bf16.vlgmr.msra.gmra.mxu2 %v352_v42 }
 0x135   : > { %v349_v43 = vpop.f32.mrf.mxu1 }
 0x1b7   : > { %v432_v47 = vpop.f32.mrf.mxu2 }
 0x1b8   : > { %v433_v48 = vadd.f32 %v785_v46, %v432_v47 }
 0x1ba   : > { %v436_v49 = vmax.f32 %v433_v48, 0.0 }
 0x1bc   : > { %v437_v50 = vpack.c.bf16 %v436_v49, %v436_v49 }
 0x1be   : > { %516 = vmatmul.bf16.vlgmr.msra.gmra.mxu3 %v437_v50 }
 0x1bf   : > { %v434_v51 = vpop.f32.mrf.mxu2 }
 0x241   : > { %v517_v53 = vpop.f32.mrf.mxu3 }
 0x242   : > { %v518_v54 = vadd.f32 %v786_v52, %v517_v53 }
 0x244   : > { %v521_v55 = vmax.f32 %v518_v54, 0.0 }
 0x246   : > { %522 = vst [vmem:[%s182_s8] sm:$0xff] %v521_v55 }
 0x249   : > { %v519_v56 = vpop.f32.mrf.mxu3 }
 0x24a PF: > { %s14_s12 = sadd.s32 1, %s827_s12  }
 0x24b   : > { %p11_p7 = scmp.ge.s32.totalorder %s14_s12, 4  }
 0x24d   :  { %13 = sbr.rel (!%p11_p7) target bundleno = 1 (0x1), region = 73 }
 0x252   :  { %542 = vsyncpa [#allocation3], 1 }
 0x253   :  { %544 = vsyncpa [#allocation3 + $0x1], 1 }

</bundles_post_ra>
